<compile_context>
chip_gen: v6e
topology: v6e:2x2x1
jax: 0.10.0
libtpu: 0.0.40
codegen_flags: <defaults>
</compile_context>

<pallas_src>
import jax
import jax.numpy as jnp
from jax.experimental import pallas as pl
from jax.experimental.pallas import tpu as pltpu

H1 = 256
H2 = 128
OUT = 3
OUT_PAD = 128          # lane-dense output width; wrapper slices [:, :OUT]
LANE = 128
SUBLANE = 8
TB_MAX = 2048          # max batch tile (rows)


def _round_up(n, m):
    return ((n + m - 1) // m) * m


def _cdiv(a, b):
    return -(-a // b)


def _choose_tiling(batch, tb_max=TB_MAX):
    """Balanced batch tiling: avoids up-to-a-full-tile of padding waste and
    guarantees >=2 grid steps on mid-size batches (v7x has 2 TCs/chip)."""
    n_tiles = _cdiv(batch, tb_max)
    if n_tiles == 1 and batch >= 512:
        n_tiles = 2
    if n_tiles == 1:
        tb = _round_up(batch, SUBLANE)         # tiny batches: block == full array
    else:
        tb = _round_up(_cdiv(batch, n_tiles), LANE)   # MXU-M / layout aligned
    b_pad = _round_up(batch, tb)
    return tb, b_pad


def mlp_kernel(x_ref, w1_ref, b1_ref, w2_ref, b2_ref, w3_ref, b3_ref, o_ref):
    # Layer 1: Linear(in, 256) + ReLU — f32 x read from HBM, cast to bf16 on the
    # VPU (large slack), f32 MXU accumulation, bias/ReLU in f32.
    x = x_ref[...].astype(jnp.bfloat16)
    h1 = jnp.dot(x, w1_ref[...], preferred_element_type=jnp.float32)
    h1 = jnp.maximum(h1 + b1_ref[...], 0.0)
    # Dropout(p) -> identity in eval mode.

    # Layer 2: Linear(256, 128) + ReLU.
    h2 = jnp.dot(h1.astype(jnp.bfloat16), w2_ref[...],
                 preferred_element_type=jnp.float32)
    h2 = jnp.maximum(h2 + b2_ref[...], 0.0)
    # Dropout(p) -> identity in eval mode.

    # Layer 3: Linear(128, 3) padded to 128 output lanes (unmasked stores),
    # stored as bf16 to halve the padded-output write stream.
    y = jnp.dot(h2.astype(jnp.bfloat16), w3_ref[...],
                preferred_element_type=jnp.float32)
    o_ref[...] = (y + b3_ref[...]).astype(o_ref.dtype)


def prepare_params(params):
    """One-time weight prep (hoisted out of the forward): bf16 casts + zero-pad
    of the 3-wide output layer to 128 lanes so the kernel's stores are unmasked."""
    w1, b1, w2, b2, w3, b3 = params
    w1p = w1.astype(jnp.bfloat16)
    w2p = w2.astype(jnp.bfloat16)
    w3p = jnp.zeros((H2, OUT_PAD), jnp.bfloat16).at[:, :OUT].set(
        w3.astype(jnp.bfloat16))
    b1p = b1.astype(jnp.float32)
    b2p = b2.astype(jnp.float32)
    b3p = jnp.zeros((1, OUT_PAD), jnp.float32).at[:, :OUT].set(
        b3.astype(jnp.float32))
    return (w1p, b1p, w2p, b2p, w3p, b3p)


def spendings_predictor_forward(x, prepared_params, tb_max=TB_MAX):
    """x: (batch, input_size) float32. Returns (batch, 3) float32 logits."""
    w1p, b1p, w2p, b2p, w3p, b3p = prepared_params
    batch, in_dim = x.shape
    assert w1p.shape[0] == in_dim

    tb, b_pad = _choose_tiling(batch, tb_max)
    if b_pad != batch:
        # Row-only zero pad (no lane pad, no dtype change). No-op when aligned.
        x = jnp.pad(x, ((0, b_pad - batch), (0, 0)))

    grid = (b_pad // tb,)
    resident = lambda shape: pl.BlockSpec(shape, lambda i: (0, 0))

    out = pl.pallas_call(
        mlp_kernel,
        out_shape=jax.ShapeDtypeStruct((b_pad, OUT_PAD), jnp.bfloat16),
        grid=grid,
        in_specs=[
            pl.BlockSpec((tb, in_dim), lambda i: (i, 0)),  # x tile (pipelined, f32)
            resident((in_dim, H1)),                        # w1 (VMEM-resident)
            resident((1, H1)),                             # b1
            resident((H1, H2)),                            # w2
            resident((1, H2)),                             # b2
            resident((H2, OUT_PAD)),                       # w3 (zero-padded)
            resident((1, OUT_PAD)),                        # b3 (zero-padded)
        ],
        out_specs=pl.BlockSpec((tb, OUT_PAD), lambda i: (i, 0)),
        compiler_params=pltpu.CompilerParams(
            dimension_semantics=("parallel",),
            vmem_limit_bytes=32 * 1024 * 1024,
        ),
    )(x, w1p, b1p, w2p, b2p, w3p, b3p)

    return out[:batch, :OUT].astype(jnp.float32)


def init_params(key, input_size):
    """Deterministic init matching nn.Linear shapes (stored transposed: (in, out))."""
    ks = jax.random.split(key, 6)

    def linear(kw, kb, fan_in, fan_out):
        bound = 1.0 / jnp.sqrt(fan_in)
        w = jax.random.uniform(kw, (fan_in, fan_out), jnp.float32, -bound, bound)
        b = jax.random.uniform(kb, (1, fan_out), jnp.float32, -bound, bound)
        return w, b

    w1, b1 = linear(ks[0], ks[1], input_size, H1)
    w2, b2 = linear(ks[2], ks[3], H1, H2)
    w3, b3 = linear(ks[4], ks[5], H2, OUT)
    return (w1, b1, w2, b2, w3, b3)


if __name__ == "__main__":
    key = jax.random.PRNGKey(0)
    k_x, k_p = jax.random.split(key)

    batch = 8
    input_size = 32

    x = jax.random.normal(k_x, (batch, input_size), jnp.float32)
    params = init_params(k_p, input_size)
    prepared = prepare_params(params)          # one-time weight prep (hoisted)

    fwd = jax.jit(spendings_predictor_forward)
    logits = fwd(x, prepared)
    jax.block_until_ready(logits)
    assert logits.shape == (batch, OUT)

    # Reference in plain JAX with the same bf16-operand / f32-accumulation math
    # and the same final bf16 output rounding (eval-mode dropout = identity).
    w1, b1, w2, b2, w3, b3 = params
    h1 = jnp.maximum(
        jnp.dot(x.astype(jnp.bfloat16), w1.astype(jnp.bfloat16),
                preferred_element_type=jnp.float32) + b1, 0.0)
    h2 = jnp.maximum(
        jnp.dot(h1.astype(jnp.bfloat16), w2.astype(jnp.bfloat16),
                preferred_element_type=jnp.float32) + b2, 0.0)
    ref = (jnp.dot(h2.astype(jnp.bfloat16), w3.astype(jnp.bfloat16),
                   preferred_element_type=jnp.float32) + b3
           ).astype(jnp.bfloat16).astype(jnp.float32)

    assert jnp.allclose(logits, ref, atol=2e-2, rtol=2e-2), (
        float(jnp.max(jnp.abs(logits - ref))))

    print("KERNEL_OK")
</pallas_src>

<mosaic_0001>
module attributes {stable_mosaic.version = 11 : i64} {
  func.func @mlp_kernel(%arg0: i32, %arg1: memref<8x32xf32, #tpu.memory_space<vmem>>, %arg2: memref<32x256xbf16, #tpu.memory_space<vmem>>, %arg3: memref<1x256xf32, #tpu.memory_space<vmem>>, %arg4: memref<256x128xbf16, #tpu.memory_space<vmem>>, %arg5: memref<1x128xf32, #tpu.memory_space<vmem>>, %arg6: memref<128x128xbf16, #tpu.memory_space<vmem>>, %arg7: memref<1x128xf32, #tpu.memory_space<vmem>>, %arg8: memref<8x128xbf16, #tpu.memory_space<vmem>>) attributes {dimension_semantics = [#tpu.dimension_semantics<parallel>], iteration_bounds = array<i64: 1>, scalar_prefetch = 0 : i64, scratch_operands = 0 : i64, tpu.core_type = #tpu.core_type<tc>, window_params = [{transform_indices = @transform_0, window_bounds = array<i64: 8, 32>}, {pipeline_mode = #tpu.pipeline_mode<synchronous>, transform_indices = @transform_1, window_bounds = array<i64: 32, 256>}, {pipeline_mode = #tpu.pipeline_mode<synchronous>, transform_indices = @transform_2, window_bounds = array<i64: 1, 256>}, {pipeline_mode = #tpu.pipeline_mode<synchronous>, transform_indices = @transform_3, window_bounds = array<i64: 256, 128>}, {pipeline_mode = #tpu.pipeline_mode<synchronous>, transform_indices = @transform_4, window_bounds = array<i64: 1, 128>}, {pipeline_mode = #tpu.pipeline_mode<synchronous>, transform_indices = @transform_5, window_bounds = array<i64: 128, 128>}, {pipeline_mode = #tpu.pipeline_mode<synchronous>, transform_indices = @transform_6, window_bounds = array<i64: 1, 128>}, {transform_indices = @transform_7, window_bounds = array<i64: 8, 128>}]} {
    %c0 = arith.constant 0 : index
    %c0_0 = arith.constant 0 : index
    %0 = vector.load %arg1[%c0, %c0_0] : memref<8x32xf32, #tpu.memory_space<vmem>>, vector<8x32xf32>
    %1 = arith.truncf %0 : vector<8x32xf32> to vector<8x32xbf16>
    %c0_1 = arith.constant 0 : index
    %c0_2 = arith.constant 0 : index
    %2 = vector.load %arg2[%c0_1, %c0_2] : memref<32x256xbf16, #tpu.memory_space<vmem>>, vector<32x256xbf16>
    %cst = arith.constant dense<0.000000e+00> : vector<8x256xf32>
    %3 = tpu.matmul %1, %2, %cst {dimension_numbers = #tpu.dot_dimension_numbers<[1], [0], [0], [1], [0, 0, 1, 1], [], []>} : vector<8x32xbf16>, vector<32x256xbf16>, vector<8x256xf32> -> vector<8x256xf32>
    %c0_3 = arith.constant 0 : index
    %c0_4 = arith.constant 0 : index
    %4 = vector.load %arg3[%c0_3, %c0_4] : memref<1x256xf32, #tpu.memory_space<vmem>>, vector<1x256xf32>
    %5 = vector.broadcast %4 : vector<1x256xf32> to vector<8x256xf32>
    %6 = arith.addf %3, %5 : vector<8x256xf32>
    %cst_5 = arith.constant 0.000000e+00 : f32
    %7 = vector.broadcast %cst_5 : f32 to vector<8x256xf32>
    %8 = arith.maximumf %6, %7 : vector<8x256xf32>
    %9 = arith.truncf %8 : vector<8x256xf32> to vector<8x256xbf16>
    %c0_6 = arith.constant 0 : index
    %c0_7 = arith.constant 0 : index
    %10 = vector.load %arg4[%c0_6, %c0_7] : memref<256x128xbf16, #tpu.memory_space<vmem>>, vector<256x128xbf16>
    %cst_8 = arith.constant dense<0.000000e+00> : vector<8x128xf32>
    %11 = tpu.matmul %9, %10, %cst_8 {dimension_numbers = #tpu.dot_dimension_numbers<[1], [0], [0], [1], [0, 0, 1, 1], [], []>} : vector<8x256xbf16>, vector<256x128xbf16>, vector<8x128xf32> -> vector<8x128xf32>
    %c0_9 = arith.constant 0 : index
    %c0_10 = arith.constant 0 : index
    %12 = vector.load %arg5[%c0_9, %c0_10] : memref<1x128xf32, #tpu.memory_space<vmem>>, vector<1x128xf32>
    %13 = vector.broadcast %12 : vector<1x128xf32> to vector<8x128xf32>
    %14 = arith.addf %11, %13 : vector<8x128xf32>
    %cst_11 = arith.constant 0.000000e+00 : f32
    %15 = vector.broadcast %cst_11 : f32 to vector<8x128xf32>
    %16 = arith.maximumf %14, %15 : vector<8x128xf32>
    %17 = arith.truncf %16 : vector<8x128xf32> to vector<8x128xbf16>
    %c0_12 = arith.constant 0 : index
    %c0_13 = arith.constant 0 : index
    %18 = vector.load %arg6[%c0_12, %c0_13] : memref<128x128xbf16, #tpu.memory_space<vmem>>, vector<128x128xbf16>
    %cst_14 = arith.constant dense<0.000000e+00> : vector<8x128xf32>
    %19 = tpu.matmul %17, %18, %cst_14 {dimension_numbers = #tpu.dot_dimension_numbers<[1], [0], [0], [1], [0, 0, 1, 1], [], []>} : vector<8x128xbf16>, vector<128x128xbf16>, vector<8x128xf32> -> vector<8x128xf32>
    %c0_15 = arith.constant 0 : index
    %c0_16 = arith.constant 0 : index
    %20 = vector.load %arg7[%c0_15, %c0_16] : memref<1x128xf32, #tpu.memory_space<vmem>>, vector<1x128xf32>
    %21 = vector.broadcast %20 : vector<1x128xf32> to vector<8x128xf32>
    %22 = arith.addf %19, %21 : vector<8x128xf32>
    %23 = arith.truncf %22 : vector<8x128xf32> to vector<8x128xbf16>
    %c0_17 = arith.constant 0 : index
    %c0_18 = arith.constant 0 : index
    %24 = vector.load %arg8[%c0_17, %c0_18] : memref<8x128xbf16, #tpu.memory_space<vmem>>, vector<8x128xbf16>
    tpu.vector_store %arg8[%c0_17, %c0_18], %23 {strides = array<i32>} : memref<8x128xbf16, #tpu.memory_space<vmem>>, vector<8x128xbf16>,
    return
  }
  func.func @transform_0(%arg0: i32) -> (i32, i32) {
    %c0_i32 = arith.constant 0 : i32
    %c0_i32_0 = arith.constant 0 : i32
    return %arg0, %c0_i32 : i32, i32
  }
  func.func @transform_1(%arg0: i32) -> (i32, i32) {
    %c0_i32 = arith.constant 0 : i32
    %c0_i32_0 = arith.constant 0 : i32
    %c0_i32_1 = arith.constant 0 : i32
    return %c0_i32, %c0_i32_0 : i32, i32
  }
  func.func @transform_2(%arg0: i32) -> (i32, i32) {
    %c0_i32 = arith.constant 0 : i32
    %c0_i32_0 = arith.constant 0 : i32
    %c0_i32_1 = arith.constant 0 : i32
    return %c0_i32, %c0_i32_0 : i32, i32
  }
  func.func @transform_3(%arg0: i32) -> (i32, i32) {
    %c0_i32 = arith.constant 0 : i32
    %c0_i32_0 = arith.constant 0 : i32
    %c0_i32_1 = arith.constant 0 : i32
    return %c0_i32, %c0_i32_0 : i32, i32
  }
  func.func @transform_4(%arg0: i32) -> (i32, i32) {
    %c0_i32 = arith.constant 0 : i32
    %c0_i32_0 = arith.constant 0 : i32
    %c0_i32_1 = arith.constant 0 : i32
    return %c0_i32, %c0_i32_0 : i32, i32
  }
  func.func @transform_5(%arg0: i32) -> (i32, i32) {
    %c0_i32 = arith.constant 0 : i32
    %c0_i32_0 = arith.constant 0 : i32
    %c0_i32_1 = arith.constant 0 : i32
    return %c0_i32, %c0_i32_0 : i32, i32
  }
  func.func @transform_6(%arg0: i32) -> (i32, i32) {
    %c0_i32 = arith.constant 0 : i32
    %c0_i32_0 = arith.constant 0 : i32
    %c0_i32_1 = arith.constant 0 : i32
    return %c0_i32, %c0_i32_0 : i32, i32
  }
  func.func @transform_7(%arg0: i32) -> (i32, i32) {
    %c0_i32 = arith.constant 0 : i32
    %c0_i32_0 = arith.constant 0 : i32
    return %arg0, %c0_i32 : i32, i32
  }
}

</mosaic_0001>

<bundles_post_ra>
// kernel: spendings_predictor_forward.1
= control target key start
LH: loop header
LB: loop body
LE: loop exit
PB: predicated region body
PF: predicated region fallthrough
CT: control target
= control target key end

     0   :  { %12 = vsyncpa [#allocation3], 0  ;;  %s748_s0 = inlined_call_operand.hbm [shape: f32[8,32], index: 0, kind: input, shape index: {}]   ;;  %s749_s1 = inlined_call_operand.hbm [shape: bf16[32,256], index: 1, kind: input, shape index: {}]   ;;  %s750_s2 = inlined_call_operand.vmem [shape: f32[1,256], index: 2, kind: input, shape index: {}]   ;;  %s751_s3 = inlined_call_operand.hbm [shape: bf16[256,128], index: 3, kind: input, shape index: {}]   ;;  %s752_s4 = inlined_call_operand.vmem [shape: f32[1,128], index: 4, kind: input, shape index: {}]   ;;  %s753_s5 = inlined_call_operand.hbm [shape: bf16[128,128], index: 5, kind: input, shape index: {}]   ;;  %s754_s6 = inlined_call_operand.vmem [shape: f32[1,128], index: 6, kind: input, shape index: {}]   ;;  %s755_s7 = inlined_call_operand.vmem [shape: bf16[8,128], index: 7, kind: output, shape index: {}]  }
   0x1   :  { %13 = vsyncpa [#allocation5], 0 }
   0x2   :  { %14 = vsyncpa [#allocation8], 0  ;;  %s673_s24 = smov [#allocation4]  }
   0x3   :  { %s30_s25 = sshll.u32 %s673_s24, 4  ;;  %s31_s25 = int_to_ptr.vmem [resolvable:$true] %s30_s25 }
   0x4   :  { %s595_s26 = scalar_lea.vmem %s31_s25, 512  ;;  %p600_p1 = scmp.lt.s32.totalorder %s31_s25, %s31_s25 }
   0x5   :  { %p596_p0 = scmp.ne.s32.totalorder %s31_s25, %s595_s26  ;;  %p601_p2 = scmp.lt.s32.totalorder %s595_s26, %s595_s26 }
   0x7   :  { %p602_p3 = por %p601_p2, %p600_p1 }
   0x9   :  { %p603_p4 = pnand %p602_p3, %p596_p0 }
   0xb   :  { %606 = shalt.err (!%p603_p4)
}
   0xc   :  { %s674_s27 = smov 128   ;;  %s675_s28 = smov 8  }
   0xd   :  { %36 = dma.hbm_to_vmem [thread:$0]  %s749_s1, 512, %s31_s25, [#allocation5], %s674_s27, %s674_s27, %s675_s28  }
   0xe   :  { %s676_s8 = smov [#allocation2]   ;;  %s677_s10 = smov [#allocation6]  }
   0xf   :  { %s21_s9 = sshll.u32 %s676_s8, 4  ;;  %s44_s11 = sshll.u32 %s677_s10, 4  ;;  %s22_s9 = int_to_ptr.vmem [resolvable:$true] %s21_s9  ;;  %s45_s11 = int_to_ptr.vmem [resolvable:$true] %s44_s11 }
  0x10   :  { %s615_s12 = scalar_lea.vmem %s22_s9, 128  ;;  %p620_p6 = scmp.lt.s32.totalorder %s22_s9, %s22_s9 }
  0x11   :  { %p616_p5 = scmp.ne.s32.totalorder %s22_s9, %s615_s12  ;;  %p621_p7 = scmp.lt.s32.totalorder %s615_s12, %s615_s12 }
  0x13   :  { %p622_p8 = por %p621_p7, %p620_p6 }
  0x15   :  { %p623_p9 = pnand %p622_p8, %p616_p5 }
  0x17   :  { %626 = shalt.err (!%p623_p9)
}
  0x18   :  { %24 = dma.hbm_to_vmem [thread:$0]  %s748_s0, 128, %s22_s9, [#allocation3]  }
  0x19   :  { %s635_s15 = scalar_lea.vmem %s45_s11, 2048  ;;  %p640_p11 = scmp.lt.s32.totalorder %s45_s11, %s45_s11 }
  0x1a   :  { %p636_p10 = scmp.ne.s32.totalorder %s45_s11, %s635_s15  ;;  %p641_p12 = scmp.lt.s32.totalorder %s635_s15, %s635_s15 }
  0x1c   :  { %p642_p13 = por %p641_p12, %p640_p11 }
  0x1e   :  { %p643_p0 = pnand %p642_p13, %p636_p10 }
  0x20   :  { %646 = shalt.err (!%p643_p0)
}
  0x21   :  { %s678_s1 = smov 64   ;;  %s679_s16 = smov 4  }
  0x22   :  { %50 = dma.hbm_to_vmem [thread:$0]  %s751_s3, 2048, %s45_s11, [#allocation5], %s678_s1, %s678_s1, %s679_s16  }
  0x23   :  { %s680_s19 = smov [#allocation7]  }
  0x24   :  { %s58_s20 = sshll.u32 %s680_s19, 4  ;;  %s59_s20 = int_to_ptr.vmem [resolvable:$true] %s58_s20 }
  0x25   :  { %s655_s21 = scalar_lea.vmem %s59_s20, 1024  ;;  %p660_p2 = scmp.lt.s32.totalorder %s59_s20, %s59_s20 }
  0x26   :  { %p656_p1 = scmp.ne.s32.totalorder %s59_s20, %s655_s21  ;;  %p661_p3 = scmp.lt.s32.totalorder %s655_s21, %s655_s21 }
  0x28   :  { %p662_p4 = por %p661_p3, %p660_p2 }
  0x2a   :  { %p663_p5 = pnand %p662_p4, %p656_p1 }
  0x2c   :  { %666 = shalt.err (!%p663_p5)
}
  0x2d   :  { %64 = dma.hbm_to_vmem [thread:$0]  %s753_s5, 1024, %s59_s20, [#allocation8], %s678_s1, %s678_s1, %s679_s16  }
  0x2e   :  { %667 = dma.done.wait [#allocation3], 128  }
  0x2f   :  { %668 = vsyncadd [#allocation3], 4294967168 }
  0x30   :  { %669 = dma.done.wait [#allocation5], 2560  }
  0x31   :  { %670 = vsyncadd [#allocation5], 4294964736 }
  0x32   :  { %671 = dma.done.wait [#allocation8], 1024  }
  0x33   :  { %672 = vsyncadd [#allocation8], 4294966272  ;;  %v681_v0 = vmov 0   ;;  %v557_v1 = vld [vmem:[#allocation4 + $0x14] ss:$8 sps:$4 sm:$0xff]   ;;  %vm118_vm0 = vcmask 261120   ;;  %v88_v29 = vlaneseq }
  0x34   :  { %154 = vmatprep.mubr.bf16.mxu0 %v681_v0  ;;  %v559_v2 = vld [vmem:[#allocation4 + $0x10] ss:$8 sps:$4 sm:$0xff]   ;;  %134 = vmatprep.subr.bf16.mxu0 %v557_v1  ;;  %v560_v3 = vld [vmem:[#allocation4 + $0x4] ss:$8 sps:$4 sm:$0xff]   ;;  %v562_v4 = vld [vmem:[#allocation4] ss:$8 sps:$4 sm:$0xff]  }
  0x35   :  { %v80_v5 = vld [vmem:[#allocation2] sm:$0xff]  ;;  %135 = vmatpush1.bf16.msra.mxu0 %v559_v2  ;;  %v565_v8 = vld [vmem:[#allocation6 + $0x70] sm:$0xff]   ;;  %v567_v11 = vld [vmem:[#allocation6 + $0x68] sm:$0xff]   ;;  %v682_v24 = vmov 0.0   ;;  %v89_v30 = vshrl.u32 %v88_v29, 7  ;;  %vm683_vm1 = vmmov 0  }
  0x36   :  { %v563_v6 = vld [vmem:[#allocation6 + $0x78] sm:$0xff]   ;;  %136 = vmatprep.subr.bf16.mxu0 %v560_v3  ;;  %v81_v9 = vpack.c.bf16 %v80_v5, %v80_v5  ;;  %v566_v10 = vld [vmem:[#allocation6 + $0x30] sm:$0xff]   ;;  %v568_v12 = vld [vmem:[#allocation6 + $0x28] sm:$0xff]  }
  0x37   :  { %v564_v7 = vld [vmem:[#allocation6 + $0x38] sm:$0xff]   ;;  %495 = vmatprep.subr.bf16.mxu1 %v563_v6  ;;  %v569_v13 = vld [vmem:[#allocation6 + $0x60] sm:$0xff]   ;;  %v573_v17 = vld [vmem:[#allocation6 + $0x50] sm:$0xff]   ;;  %v90_v31 = vsub.s32 0, %v89_v30  ;;  %v94_v33 = vsub.s32 1, %v89_v30 }
  0x38   :  { %496 = vmatpush3.bf16.msra.mxu1 %v564_v7  ;;  %v570_v14 = vld [vmem:[#allocation6 + $0x20] sm:$0xff]   ;;  %v571_v15 = vld [vmem:[#allocation6 + $0x58] sm:$0xff]   ;;  %v574_v18 = vld [vmem:[#allocation6 + $0x10] sm:$0xff]  }
  0x39   :  { %137 = vmatpush1.bf16.msra.mxu0 %v562_v4  ;;  %497 = vmatprep.subr.bf16.mxu1 %v565_v8  ;;  %v572_v16 = vld [vmem:[#allocation6 + $0x18] sm:$0xff]   ;;  %v575_v19 = vld [vmem:[#allocation6 + $0x48] sm:$0xff]   ;;  %v577_v21 = vld [vmem:[#allocation6 + $0x40] sm:$0xff]  }
  0x3a   :  { %v576_v20 = vld [vmem:[#allocation6 + $0x8] sm:$0xff]   ;;  %v578_v22 = vld [vmem:[#allocation6] sm:$0xff]   ;;  %v579_v23 = vld [vmem:[#allocation7 + $0x38] sm:$0xff]   ;;  %526 = vmatprep.subr.bf16.mxu0 %v682_v24 }
  0x3b   :  { %v580_v25 = vld [vmem:[#allocation7 + $0x30] sm:$0xff]   ;;  %v581_v26 = vld [vmem:[#allocation7 + $0x28] sm:$0xff]   ;;  %v582_v27 = vld [vmem:[#allocation7 + $0x20] sm:$0xff]  }
  0x3c   :  { %468 = vmatmul.mubr.msk.bf16.vlgmr.msra.gmra.mxu0 %vm118_vm0, %v81_v9  ;;  %498 = vmatpush3.bf16.msra.mxu1 %v566_v10  ;;  %v583_v28 = vld [vmem:[#allocation7 + $0x18] sm:$0xff]   ;;  %v584_v46 = vld [vmem:[#allocation7 + $0x10] sm:$0xff]   ;;  %v585_v47 = vld [vmem:[#allocation7 + $0x8] sm:$0xff]  }
  0x3d   :  { %499 = vmatprep.subr.bf16.mxu1 %v567_v11  ;;  %527 = vmatpush3.bf16.msra.mxu0 %v579_v23  ;;  %v86_v32 = vld [vmem:[%s750_s2] sm:$0x3]  ;;  %v586_v48 = vld [vmem:[#allocation7] sm:$0xff]  }
  0x3e   :  { %528 = vmatprep.subr.bf16.mxu0 %v682_v24  ;;  %v91_v34 = vrot.slane %v86_v32, %v90_v31  ;;  %v95_v35 = vrot.slane %v86_v32, %v94_v33  ;;  %542 = vmatprep.mubr.msk.bf16.mxu0 %vm683_vm1, %v682_v24  ;;  %v469_v50 = vld [vmem:[%s752_s4] ss:$0 sm:$0xff] }
  0x3f   :  { %v486_v58 = vld [vmem:[%s754_s6] ss:$0 sm:$0xff] }
  0x40   :  { %500 = vmatpush3.bf16.msra.mxu1 %v568_v12 }
  0x41   :  { %501 = vmatprep.subr.bf16.mxu1 %v569_v13  ;;  %529 = vmatpush3.bf16.msra.mxu0 %v580_v25 }
  0x42   :  { %530 = vmatprep.subr.bf16.mxu0 %v682_v24 }
  0x44   :  { %502 = vmatpush3.bf16.msra.mxu1 %v570_v14 }
  0x45   :  { %503 = vmatprep.subr.bf16.mxu1 %v571_v15  ;;  %531 = vmatpush3.bf16.msra.mxu0 %v581_v26 }
  0x46   :  { %532 = vmatprep.subr.bf16.mxu0 %v682_v24 }
  0x48   :  { %504 = vmatpush3.bf16.msra.mxu1 %v572_v16 }
  0x49   :  { %505 = vmatprep.subr.bf16.mxu1 %v573_v17  ;;  %533 = vmatpush3.bf16.msra.mxu0 %v582_v27 }
  0x4a   :  { %534 = vmatprep.subr.bf16.mxu0 %v682_v24 }
  0x4c   :  { %506 = vmatpush3.bf16.msra.mxu1 %v574_v18 }
  0x4d   :  { %507 = vmatprep.subr.bf16.mxu1 %v575_v19  ;;  %535 = vmatpush3.bf16.msra.mxu0 %v583_v28 }
  0x4e   :  { %536 = vmatprep.subr.bf16.mxu0 %v682_v24 }
  0x50   :  { %508 = vmatpush3.bf16.msra.mxu1 %v576_v20 }
  0x51   :  { %509 = vmatprep.subr.bf16.mxu1 %v577_v21  ;;  %537 = vmatpush3.bf16.msra.mxu0 %v584_v46 }
  0x52   :  { %538 = vmatprep.subr.bf16.mxu0 %v682_v24 }
  0x54   :  { %510 = vmatpush3.bf16.msra.mxu1 %v578_v22 }
  0x55   :  { %539 = vmatpush3.bf16.msra.mxu0 %v585_v47 }
  0x56   :  { %540 = vmatprep.subr.bf16.mxu0 %v682_v24 }
  0x59   :  { %541 = vmatpush3.bf16.msra.mxu0 %v586_v48 }
  0xfc   :  { %v156_v36 = vpop.f32.mrf.mxu0 }
  0xfd   :  { %v157_v37 = vadd.f32 %v156_v36, %v91_v34 }
  0xfe   :  { %v158_v38 = vpop.f32.mrf.mxu0 }
  0xff   :  { %v159_v39 = vadd.f32 %v158_v38, %v95_v35  ;;  %v163_v40 = vmax.f32 %v157_v37, 0.0 }
 0x100   :  { %v160_v41 = vpop.f32.mrf.mxu0 }
 0x101   :  { %v164_v42 = vmax.f32 %v159_v39, 0.0  ;;  %v165_v45 = vpack.c.bf16 %v163_v40, %v163_v40 }
 0x102   :  { %v161_v43 = vpop.f32.mrf.mxu0 }
 0x103   :  { %v166_v44 = vpack.c.bf16 %v164_v42, %v164_v42 }
 0x105   :  { %334 = vmatprep.mubr.bf16.mxu1 %v166_v44 }
 0x106   :  { %335 = vmatmul.mubr.bf16.vlgmr.msra.gmra.mxu1 %v165_v45 }
 0x1c6   :  { %v511_v49 = vpop.f32.mrf.mxu1 }
 0x1c8   :  { %v512_v51 = vpop.f32.mrf.mxu1 }
 0x1c9   :  { %v513_v52 = vadd.f32 %v512_v51, %v511_v49 }
 0x1ca   :  { %v514_v53 = vpop.f32.mrf.mxu1 }
 0x1cb   :  { %v337_v54 = vadd.f32 %v513_v52, %v469_v50 }
 0x1cc   :  { %v515_v55 = vpop.f32.mrf.mxu1 }
 0x1cd   :  { %v342_v56 = vmax.f32 %v337_v54, 0.0 }
 0x1cf   :  { %v343_v57 = vpack.c.bf16 %v342_v56, %v342_v56 }
 0x1d1   :  { %543 = vmatmul.mubr.bf16.vlgmr.msra.gmra.mxu0 %v343_v57 }
 0x291   :  { %v449_v59 = vpop.f32.mrf.mxu0 }
 0x292   :  { %v450_v60 = vadd.f32 %v486_v58, %v449_v59 }
 0x293   :  { %v544_v61 = vpop.f32.mrf.mxu0 }
 0x294   :  { %v455_v62 = vpack.c.bf16 %v450_v60, %v450_v60 }
 0x295   :  { %v452_v63 = vpop.f32.mrf.mxu0 }
 0x296   :  { %456 = vst [vmem:[%s755_s7] sm:$0xf] %v455_v62 }
 0x297   :  { %v545_v0 = vpop.f32.mrf.mxu0 }
 0x298   :  { %461 = vsyncpa [#allocation3], 1 }
 0x299   :  { %462 = vsyncpa [#allocation5], 1 }
 0x29a   :  { %463 = vsyncpa [#allocation8], 1 }

</bundles_post_ra>
